<compile_context>
chip_gen: v7x
topology: tpu7x:2x2x1
jax: 0.10.0
libtpu: 0.0.40
codegen_flags: <defaults>
</compile_context>

<pallas_src>
import jax
import jax.numpy as jnp
from jax.experimental import pallas as pl
from jax.experimental.pallas import tpu as pltpu

HIDDEN_UNITS = (100, 50)
H0, H1 = HIDDEN_UNITS
H0_PAD = 128          # 100 -> 128 lanes
H1_PAD = 128          # 50  -> 128 lanes


def _round_up(n, m):
    return ((n + m - 1) // m) * m


# ---------------------------------------------------------------------------
# Kernel
# ---------------------------------------------------------------------------
def mine_kernel(xy_ref, wxy_ref, bxy_ref, wh_ref, bh_ref, wo_ref, bo_ref,
                out_ref):
    # Layer 1: (TB, Kin)bf16 @ (Kin, 128)bf16 -> f32 accumulate, bias, ReLU.
    h = jnp.dot(xy_ref[...], wxy_ref[...],
                preferred_element_type=jnp.float32) + bxy_ref[...]
    h = jnp.maximum(h, 0.0)

    # Layer 2: (TB, 128)bf16 @ (128, 128)bf16 -> f32, bias, ReLU.
    h2 = jnp.dot(h.astype(jnp.bfloat16), wh_ref[...],
                 preferred_element_type=jnp.float32) + bh_ref[...]
    h2 = jnp.maximum(h2, 0.0)

    # Output layer (50 -> 1, padded to 128 zero lanes): VPU multiply +
    # cross-lane reduce instead of an N=1 MXU matmul.
    out = jnp.sum(h2 * wo_ref[...], axis=-1, keepdims=True) + bo_ref[...]
    out_ref[...] = out.astype(out_ref.dtype)


# ---------------------------------------------------------------------------
# Parameter packing (done ONCE, outside the kernel / per-step path)
# ---------------------------------------------------------------------------
def pack_params(p):
    """Stack fc_x/fc_y, pad hidden widths to 128 lanes, cast MXU operands to bf16.

    Incoming params use (in_features, out_features) weight layout and (1, out)
    biases. Zero padding keeps padded lanes exactly 0 through bias+ReLU, so the
    final reduction is unaffected.
    """
    wxy = jnp.concatenate([p["wx"], p["wy"]], axis=0)           # (Kin, 100)
    bxy = p["bx"] + p["by"]                                     # (1, 100)
    wxy = jnp.pad(wxy, ((0, 0), (0, H0_PAD - H0))).astype(jnp.bfloat16)
    bxy = jnp.pad(bxy, ((0, 0), (0, H0_PAD - H0)))              # f32 (1, 128)

    wh = jnp.pad(p["wh"], ((0, H0_PAD - H0), (0, H1_PAD - H1))).astype(jnp.bfloat16)
    bh = jnp.pad(p["bh"], ((0, 0), (0, H1_PAD - H1)))           # f32 (1, 128)

    wo = jnp.pad(p["wo"].T, ((0, 0), (0, H1_PAD - H1)))         # f32 (1, 128)
    bo = p["bo"]                                                # f32 (1, 1)
    return dict(wxy=wxy, bxy=bxy, wh=wh, bh=bh, wo=wo, bo=bo)


# ---------------------------------------------------------------------------
# Wrapper
# ---------------------------------------------------------------------------
def mine_forward(x, y, packed, *, tb=None):
    """x: (B, x_size) f32, y: (B, y_size) f32, packed: output of pack_params."""
    B = x.shape[0]
    kin = x.shape[1] + y.shape[1]

    # Batch tile: large, MXU-M aligned (multiple of 256), but no bigger than
    # the (padded) problem. Per-tile footprint is tiny, so this fits VMEM on
    # v5e/v6e (128 MiB) and v7x (64 MiB) with double buffering.
    if tb is None:
        tb = min(1024, _round_up(max(B, 1), 256))
    b_pad = _round_up(B, tb)

    # One concatenated, bf16 activation stream.
    xy = jnp.concatenate([x, y], axis=1).astype(jnp.bfloat16)
    if b_pad != B:
        xy = jnp.pad(xy, ((0, b_pad - B), (0, 0)))

    grid = (b_pad // tb,)
    w_bytes = (kin * H0_PAD + H0_PAD * H1_PAD) * 2 + (3 * H0_PAD + 1) * 4

    out = pl.pallas_call(
        mine_kernel,
        out_shape=jax.ShapeDtypeStruct((b_pad, 1), jnp.float32),
        grid_spec=pltpu.PrefetchScalarGridSpec(
            num_scalar_prefetch=0,
            grid=grid,
            in_specs=[
                # streamed activations: tiled along batch
                pl.BlockSpec((tb, kin), lambda i: (i, 0)),
                # weights / biases: resident, DMA'd once (block (0, 0) always)
                pl.BlockSpec((kin, H0_PAD), lambda i: (0, 0)),
                pl.BlockSpec((1, H0_PAD), lambda i: (0, 0)),
                pl.BlockSpec((H0_PAD, H1_PAD), lambda i: (0, 0)),
                pl.BlockSpec((1, H1_PAD), lambda i: (0, 0)),
                pl.BlockSpec((1, H1_PAD), lambda i: (0, 0)),
                pl.BlockSpec((1, 1), lambda i: (0, 0)),
            ],
            out_specs=pl.BlockSpec((tb, 1), lambda i: (i, 0)),
        ),
        compiler_params=pltpu.CompilerParams(
            dimension_semantics=("parallel",),   # shard batch tiles over v7x's 2 TCs
        ),
        cost_estimate=pl.CostEstimate(
            flops=2 * b_pad * (kin * H0_PAD + H0_PAD * H1_PAD + H1_PAD),
            transcendentals=0,
            bytes_accessed=b_pad * (kin * 2 + 4) + w_bytes,
        ),
    )(xy, packed["wxy"], packed["bxy"], packed["wh"], packed["bh"],
      packed["wo"], packed["bo"])

    return out[:B]


# ---------------------------------------------------------------------------
# Init + references
# ---------------------------------------------------------------------------
def init_params(key, x_size, y_size):
    """PyTorch-style uniform(+/- 1/sqrt(fan_in)) init; weights as (in, out)."""
    def linear(key, fan_in, fan_out):
        kw, kb = jax.random.split(key)
        bound = 1.0 / jnp.sqrt(float(fan_in))
        w = jax.random.uniform(kw, (fan_in, fan_out), jnp.float32, -bound, bound)
        b = jax.random.uniform(kb, (1, fan_out), jnp.float32, -bound, bound)
        return w, b

    k1, k2, k3, k4 = jax.random.split(key, 4)
    wx, bx = linear(k1, x_size, H0)
    wy, by = linear(k2, y_size, H0)
    wh, bh = linear(k3, H0, H1)
    wo, bo = linear(k4, H1, 1)
    return dict(wx=wx, bx=bx, wy=wy, by=by, wh=wh, bh=bh, wo=wo, bo=bo)


def mine_reference_f32(x, y, p):
    """Pure f32 reference (exact PyTorch-module semantics)."""
    h = jnp.maximum(x @ p["wx"] + p["bx"] + y @ p["wy"] + p["by"], 0.0)
    h = jnp.maximum(h @ p["wh"] + p["bh"], 0.0)
    return h @ p["wo"] + p["bo"]


def mine_reference_bf16(x, y, p):
    """Reference emulating the kernel's bf16 operands / f32 accumulation."""
    bf = lambda a: a.astype(jnp.bfloat16).astype(jnp.float32)
    h = bf(x) @ bf(p["wx"]) + p["bx"] + bf(y) @ bf(p["wy"]) + p["by"]
    h = jnp.maximum(h, 0.0)
    h2 = jnp.maximum(bf(h) @ bf(p["wh"]) + p["bh"], 0.0)
    return h2 @ p["wo"] + p["bo"]


if __name__ == "__main__":
    key = jax.random.PRNGKey(0)
    kx, ky, kp = jax.random.split(key, 3)

    batch = 64
    x_size = 32   # embedding size
    y_size = 16   # input/target data dimension

    x = jax.random.normal(kx, (batch, x_size), jnp.float32)
    y = jax.random.normal(ky, (batch, y_size), jnp.float32)
    params = init_params(kp, x_size, y_size)
    packed = pack_params(params)

    out = mine_forward(x, y, packed)
    out = jax.block_until_ready(out)
    assert out.shape == (batch, 1)

    # Tight check against a reference that uses the same bf16-operand /
    # f32-accumulate math as the kernel.
    ref_bf16 = mine_reference_bf16(x, y, params)
    assert jnp.allclose(out, ref_bf16, atol=1e-3, rtol=1e-3)

    # Loose semantic check against the exact f32 PyTorch-equivalent math
    # (difference is only bf16 operand rounding on the MXU inputs).
    ref_f32 = mine_reference_f32(x, y, params)
    assert jnp.allclose(out, ref_f32, atol=1e-1, rtol=1e-1)

    print("KERNEL_OK")
</pallas_src>

<mosaic_0001>
module attributes {stable_mosaic.version = 11 : i64} {
  func.func @mine_kernel(%arg0: i32, %arg1: memref<256x48xbf16, #tpu.memory_space<vmem>>, %arg2: memref<48x128xbf16, #tpu.memory_space<vmem>>, %arg3: memref<1x128xf32, #tpu.memory_space<vmem>>, %arg4: memref<128x128xbf16, #tpu.memory_space<vmem>>, %arg5: memref<1x128xf32, #tpu.memory_space<vmem>>, %arg6: memref<1x128xf32, #tpu.memory_space<vmem>>, %arg7: memref<1x1xf32, #tpu.memory_space<vmem>>, %arg8: memref<256x1xf32, #tpu.memory_space<vmem>>) attributes {dimension_semantics = [#tpu.dimension_semantics<parallel>], iteration_bounds = array<i64: 1>, scalar_prefetch = 0 : i64, scratch_operands = 0 : i64, tpu.core_type = #tpu.core_type<tc>, window_params = [{transform_indices = @transform_0, window_bounds = array<i64: 256, 48>}, {pipeline_mode = #tpu.pipeline_mode<synchronous>, transform_indices = @transform_1, window_bounds = array<i64: 48, 128>}, {pipeline_mode = #tpu.pipeline_mode<synchronous>, transform_indices = @transform_2, window_bounds = array<i64: 1, 128>}, {pipeline_mode = #tpu.pipeline_mode<synchronous>, transform_indices = @transform_3, window_bounds = array<i64: 128, 128>}, {pipeline_mode = #tpu.pipeline_mode<synchronous>, transform_indices = @transform_4, window_bounds = array<i64: 1, 128>}, {pipeline_mode = #tpu.pipeline_mode<synchronous>, transform_indices = @transform_5, window_bounds = array<i64: 1, 128>}, {pipeline_mode = #tpu.pipeline_mode<synchronous>, transform_indices = @transform_6, window_bounds = array<i64: 1, 1>}, {transform_indices = @transform_7, window_bounds = array<i64: 256, 1>}]} {
    %c0 = arith.constant 0 : index
    %c0_0 = arith.constant 0 : index
    %0 = vector.load %arg1[%c0, %c0_0] : memref<256x48xbf16, #tpu.memory_space<vmem>>, vector<256x48xbf16>
    %c0_1 = arith.constant 0 : index
    %c0_2 = arith.constant 0 : index
    %1 = vector.load %arg2[%c0_1, %c0_2] : memref<48x128xbf16, #tpu.memory_space<vmem>>, vector<48x128xbf16>
    %cst = arith.constant dense<0.000000e+00> : vector<256x128xf32>
    %2 = tpu.matmul %0, %1, %cst {dimension_numbers = #tpu.dot_dimension_numbers<[1], [0], [0], [1], [0, 0, 1, 1], [], []>} : vector<256x48xbf16>, vector<48x128xbf16>, vector<256x128xf32> -> vector<256x128xf32>
    %c0_3 = arith.constant 0 : index
    %c0_4 = arith.constant 0 : index
    %3 = vector.load %arg3[%c0_3, %c0_4] : memref<1x128xf32, #tpu.memory_space<vmem>>, vector<1x128xf32>
    %4 = vector.broadcast %3 : vector<1x128xf32> to vector<256x128xf32>
    %5 = arith.addf %2, %4 : vector<256x128xf32>
    %cst_5 = arith.constant 0.000000e+00 : f32
    %6 = vector.broadcast %cst_5 : f32 to vector<256x128xf32>
    %7 = arith.maximumf %5, %6 : vector<256x128xf32>
    %8 = arith.truncf %7 : vector<256x128xf32> to vector<256x128xbf16>
    %c0_6 = arith.constant 0 : index
    %c0_7 = arith.constant 0 : index
    %9 = vector.load %arg4[%c0_6, %c0_7] : memref<128x128xbf16, #tpu.memory_space<vmem>>, vector<128x128xbf16>
    %cst_8 = arith.constant dense<0.000000e+00> : vector<256x128xf32>
    %10 = tpu.matmul %8, %9, %cst_8 {dimension_numbers = #tpu.dot_dimension_numbers<[1], [0], [0], [1], [0, 0, 1, 1], [], []>} : vector<256x128xbf16>, vector<128x128xbf16>, vector<256x128xf32> -> vector<256x128xf32>
    %c0_9 = arith.constant 0 : index
    %c0_10 = arith.constant 0 : index
    %11 = vector.load %arg5[%c0_9, %c0_10] : memref<1x128xf32, #tpu.memory_space<vmem>>, vector<1x128xf32>
    %12 = vector.broadcast %11 : vector<1x128xf32> to vector<256x128xf32>
    %13 = arith.addf %10, %12 : vector<256x128xf32>
    %cst_11 = arith.constant 0.000000e+00 : f32
    %14 = vector.broadcast %cst_11 : f32 to vector<256x128xf32>
    %15 = arith.maximumf %13, %14 : vector<256x128xf32>
    %c0_12 = arith.constant 0 : index
    %c0_13 = arith.constant 0 : index
    %16 = vector.load %arg6[%c0_12, %c0_13] : memref<1x128xf32, #tpu.memory_space<vmem>>, vector<1x128xf32>
    %17 = vector.broadcast %16 : vector<1x128xf32> to vector<256x128xf32>
    %18 = arith.mulf %15, %17 : vector<256x128xf32>
    %cst_14 = arith.constant dense<0.000000e+00> : vector<256xf32>
    %19 = vector.multi_reduction <add>, %18, %cst_14 [1] : vector<256x128xf32> to vector<256xf32>
    %20 = vector.shape_cast %19 : vector<256xf32> to vector<256x1xf32>
    %c0_15 = arith.constant 0 : index
    %c0_16 = arith.constant 0 : index
    %21 = vector.load %arg7[%c0_15, %c0_16] : memref<1x1xf32, #tpu.memory_space<vmem>>, vector<1x1xf32>
    %22 = vector.broadcast %21 : vector<1x1xf32> to vector<256x1xf32>
    %23 = arith.addf %20, %22 : vector<256x1xf32>
    %c0_17 = arith.constant 0 : index
    %c0_18 = arith.constant 0 : index
    %24 = vector.load %arg8[%c0_17, %c0_18] : memref<256x1xf32, #tpu.memory_space<vmem>>, vector<256x1xf32>
    tpu.vector_store %arg8[%c0_17, %c0_18], %23 {strides = array<i32>} : memref<256x1xf32, #tpu.memory_space<vmem>>, vector<256x1xf32>,
    return
  }
  func.func @transform_0(%arg0: i32) -> (i32, i32) {
    %c0_i32 = arith.constant 0 : i32
    %c0_i32_0 = arith.constant 0 : i32
    return %arg0, %c0_i32 : i32, i32
  }
  func.func @transform_1(%arg0: i32) -> (i32, i32) {
    %c0_i32 = arith.constant 0 : i32
    %c0_i32_0 = arith.constant 0 : i32
    %c0_i32_1 = arith.constant 0 : i32
    return %c0_i32, %c0_i32_0 : i32, i32
  }
  func.func @transform_2(%arg0: i32) -> (i32, i32) {
    %c0_i32 = arith.constant 0 : i32
    %c0_i32_0 = arith.constant 0 : i32
    %c0_i32_1 = arith.constant 0 : i32
    return %c0_i32, %c0_i32_0 : i32, i32
  }
  func.func @transform_3(%arg0: i32) -> (i32, i32) {
    %c0_i32 = arith.constant 0 : i32
    %c0_i32_0 = arith.constant 0 : i32
    %c0_i32_1 = arith.constant 0 : i32
    return %c0_i32, %c0_i32_0 : i32, i32
  }
  func.func @transform_4(%arg0: i32) -> (i32, i32) {
    %c0_i32 = arith.constant 0 : i32
    %c0_i32_0 = arith.constant 0 : i32
    %c0_i32_1 = arith.constant 0 : i32
    return %c0_i32, %c0_i32_0 : i32, i32
  }
  func.func @transform_5(%arg0: i32) -> (i32, i32) {
    %c0_i32 = arith.constant 0 : i32
    %c0_i32_0 = arith.constant 0 : i32
    %c0_i32_1 = arith.constant 0 : i32
    return %c0_i32, %c0_i32_0 : i32, i32
  }
  func.func @transform_6(%arg0: i32) -> (i32, i32) {
    %c0_i32 = arith.constant 0 : i32
    %c0_i32_0 = arith.constant 0 : i32
    %c0_i32_1 = arith.constant 0 : i32
    return %c0_i32, %c0_i32_0 : i32, i32
  }
  func.func @transform_7(%arg0: i32) -> (i32, i32) {
    %c0_i32 = arith.constant 0 : i32
    %c0_i32_0 = arith.constant 0 : i32
    return %arg0, %c0_i32 : i32, i32
  }
}

</mosaic_0001>

<bundles_post_ra>
// kernel: tpu_custom_call.1
= control target key start
LH: loop header
LB: loop body
LE: loop exit
PB: predicated region body
PF: predicated region fallthrough
CT: control target
= control target key end

     0   :  { %vm172_vm0 = vcmask 392192   ;;  %vm836_vm1 = vcmask 7168   ;;  %s1505_s1 = inlined_call_operand.vmem [shape: bf16[48,128], index: 1, kind: input, shape index: {}]   ;;  %s1506_s0 = inlined_call_operand.vmem [shape: bf16[256,48], index: 0, kind: input, shape index: {}]   ;;  %s1507_s3 = inlined_call_operand.vmem [shape: bf16[128,128], index: 3, kind: input, shape index: {}]   ;;  %s1508_s2 = inlined_call_operand.vmem [shape: f32[1,128], index: 2, kind: input, shape index: {}]   ;;  %s1509_s6 = inlined_call_operand.<no memory space> [shape: f32[1,1], index: 6, kind: input, shape index: {}]   ;;  %s1510_s4 = inlined_call_operand.vmem [shape: f32[1,128], index: 4, kind: input, shape index: {}]   ;;  %s1511_s5 = inlined_call_operand.vmem [shape: f32[1,128], index: 5, kind: input, shape index: {}]   ;;  %s1512_s7 = inlined_call_operand.vmem [shape: f32[256,1], index: 7, kind: output, shape index: {}]  }
   0x1   :  { %v1065_v0 = vld [vmem:[%s1505_s1] sm:$0xff]   ;;  %v1066_v1 = vld [vmem:[%s1505_s1 + $0x8] sm:$0xff]   ;;  %v1067_v3 = vld [vmem:[%s1505_s1 + $0x10] sm:$0xff]  }
   0x2   :  { %963 = vmatprep.subr.bf16.mxu0 %v1065_v0  ;;  %v1068_v2 = vld [vmem:[%s1506_s0] sm:$0xff]   ;;  %v1069_v4 = vld [vmem:[%s1506_s0 + $0x8] sm:$0xff]   ;;  %v1070_v5 = vld [vmem:[%s1506_s0 + $0x10] sm:$0xff]  }
   0x3   :  { %964 = vmatpush3.bf16.msra.mxu0 %v1065_v0  ;;  %969 = vmatprep.mubr.msk.bf16.mxu0 %vm172_vm0, %v1068_v2  ;;  %v1071_v6 = vld [vmem:[%s1506_s0 + $0x18] sm:$0xff]   ;;  %v1072_v7 = vld [vmem:[%s1506_s0 + $0x20] sm:$0xff]   ;;  %v1085_v9 = vld [vmem:[%s1507_s3 + $0x8] sm:$0xff]  }
   0x4   :  { %965 = vmatprep.subr.bf16.mxu0 %v1066_v1  ;;  %v1084_v8 = vld [vmem:[%s1507_s3] sm:$0xff]   ;;  %v1086_v10 = vld [vmem:[%s1507_s3 + $0x10] sm:$0xff]   ;;  %v1073_v11 = vld [vmem:[%s1506_s0 + $0x28] sm:$0xff]  }
   0x5   :  { %1049 = vmatprep.subr.bf16.mxu1 %v1084_v8  ;;  %v1074_v12 = vld [vmem:[%s1506_s0 + $0x30] sm:$0xff]   ;;  %v1087_v13 = vld [vmem:[%s1507_s3 + $0x18] sm:$0xff]   ;;  %v1088_v14 = vld [vmem:[%s1507_s3 + $0x20] sm:$0xff]  }
   0x6   :  { %1057 = vmatpush3.bf16.msra.mxu1 %v1084_v8  ;;  %v1075_v15 = vld [vmem:[%s1506_s0 + $0x38] sm:$0xff]   ;;  %v1076_v16 = vld [vmem:[%s1506_s0 + $0x40] sm:$0xff]   ;;  %v1089_v17 = vld [vmem:[%s1507_s3 + $0x28] sm:$0xff]  }
   0x7   :  { %966 = vmatpush3.bf16.msra.mxu0 %v1066_v1  ;;  %1050 = vmatprep.subr.bf16.mxu1 %v1085_v9  ;;  %v1090_v18 = vld [vmem:[%s1507_s3 + $0x30] sm:$0xff]   ;;  %v1077_v19 = vld [vmem:[%s1506_s0 + $0x48] sm:$0xff]   ;;  %v1079_v21 = vld [vmem:[%s1506_s0 + $0x58] sm:$0xff]  }
   0x8   :  { %967 = vmatprep.subr.bf16.mxu0 %v1067_v3  ;;  %v1078_v20 = vld [vmem:[%s1506_s0 + $0x50] sm:$0xff]   ;;  %v1080_v22 = vld [vmem:[%s1506_s0 + $0x60] sm:$0xff]   ;;  %v1081_v23 = vld [vmem:[%s1506_s0 + $0x68] sm:$0xff]  }
   0x9   :  { %v1082_v24 = vld [vmem:[%s1506_s0 + $0x70] sm:$0xff]   ;;  %v1083_v25 = vld [vmem:[%s1506_s0 + $0x78] sm:$0xff]   ;;  %v1232_v27 = vld [vmem:[%s1508_s2] ss:$0 sm:$0xff] }
   0xa   :  { %1058 = vmatpush3.bf16.msra.mxu1 %v1085_v9  ;;  %v1091_v26 = vld [vmem:[%s1507_s3 + $0x38] sm:$0xff]  }
   0xb   :  { %968 = vmatpush3.bf16.msra.mxu0 %v1067_v3  ;;  %1051 = vmatprep.subr.bf16.mxu1 %v1086_v10 }
   0xc   :  { %1001 = vmatprep.subr.bf16.mxu0 %v1084_v8 }
   0xe   :  { %970 = vmatmul.mubr.msk.bf16.vlgmr.msra.gmra.mrb[0].mxu0 %vm172_vm0, %v1069_v4  ;;  %1059 = vmatpush3.bf16.msra.mxu1 %v1086_v10 }
   0xf   :  { %973 = vmatprep.mubr.msk.bf16.mxu0 %vm172_vm0, %v1070_v5  ;;  %1002 = vmatpush3.bf16.msra.mxu0 %v1084_v8 }
  0x10   :  { %1003 = vmatprep.subr.bf16.mxu0 %v1085_v9  ;;  %1052 = vmatprep.subr.bf16.mxu1 %v1087_v13 }
  0x12   :  { %1060 = vmatpush3.bf16.msra.mxu1 %v1087_v13 }
  0x13   :  { %1004 = vmatpush3.bf16.msra.mxu0 %v1085_v9  ;;  %1053 = vmatprep.subr.bf16.mxu1 %v1088_v14 }
  0x14   :  { %1005 = vmatprep.subr.bf16.mxu0 %v1086_v10 }
  0x16   :  { %974 = vmatmul.mubr.msk.bf16.gmra.mrb[4].mxu0 %vm172_vm0, %v1071_v6  ;;  %1061 = vmatpush3.bf16.msra.mxu1 %v1088_v14 }
  0x17   :  { %977 = vmatprep.mubr.msk.bf16.mxu0 %vm172_vm0, %v1072_v7  ;;  %1006 = vmatpush3.bf16.msra.mxu0 %v1086_v10 }
  0x18   :  { %1007 = vmatprep.subr.bf16.mxu0 %v1087_v13  ;;  %1054 = vmatprep.subr.bf16.mxu1 %v1089_v17 }
  0x1a   :  { %1062 = vmatpush3.bf16.msra.mxu1 %v1089_v17 }
  0x1b   :  { %1008 = vmatpush3.bf16.msra.mxu0 %v1087_v13  ;;  %1055 = vmatprep.subr.bf16.mxu1 %v1090_v18 }
  0x1c   :  { %1009 = vmatprep.subr.bf16.mxu0 %v1088_v14 }
  0x1e   :  { %978 = vmatmul.mubr.msk.bf16.gmra.mrb[8].mxu0 %vm172_vm0, %v1073_v11  ;;  %1063 = vmatpush3.bf16.msra.mxu1 %v1090_v18 }
  0x1f   :  { %981 = vmatprep.mubr.msk.bf16.mxu0 %vm172_vm0, %v1074_v12  ;;  %1010 = vmatpush3.bf16.msra.mxu0 %v1088_v14 }
  0x20   :  { %1011 = vmatprep.subr.bf16.mxu0 %v1089_v17  ;;  %1056 = vmatprep.subr.bf16.mxu1 %v1091_v26 }
  0x22   :  { %1064 = vmatpush3.bf16.msra.mxu1 %v1091_v26 }
  0x23   :  { %1012 = vmatpush3.bf16.msra.mxu0 %v1089_v17 }
  0x24   :  { %1013 = vmatprep.subr.bf16.mxu0 %v1090_v18 }
  0x26   :  { %982 = vmatmul.mubr.msk.bf16.gmra.mrb[12].mxu0 %vm172_vm0, %v1075_v15 }
  0x27   :  { %985 = vmatprep.mubr.msk.bf16.mxu0 %vm172_vm0, %v1076_v16  ;;  %1014 = vmatpush3.bf16.msra.mxu0 %v1090_v18 }
  0x28   :  { %1015 = vmatprep.subr.bf16.mxu0 %v1091_v26 }
  0x2b   :  { %1016 = vmatpush3.bf16.msra.mxu0 %v1091_v26 }
  0x2e   :  { %986 = vmatmul.mubr.msk.bf16.gmra.mrb[16].mxu0 %vm172_vm0, %v1077_v19 }
  0x2f   :  { %989 = vmatprep.mubr.msk.bf16.mxu0 %vm172_vm0, %v1078_v20 }
  0x36   :  { %990 = vmatmul.mubr.msk.bf16.gmra.mrb[20].mxu0 %vm172_vm0, %v1079_v21 }
  0x37   :  { %993 = vmatprep.mubr.msk.bf16.mxu0 %vm172_vm0, %v1080_v22 }
  0x3e   :  { %994 = vmatmul.mubr.msk.bf16.gmra.mrb[24].mxu0 %vm172_vm0, %v1081_v23 }
  0x3f   :  { %997 = vmatprep.mubr.msk.bf16.mxu0 %vm172_vm0, %v1082_v24 }
  0x46   :  { %998 = vmatmul.mubr.msk.bf16.gmra.mrb[28].mxu0 %vm172_vm0, %v1083_v25 }
  0xe1   :  { %v971_v28 = vpop.f32.mrb[0].mxu0 }
  0xe2   :  { %v264_v29 = vadd.f32 %v971_v28, %v1232_v27  ;;  %v255_v30 = vpop.f32.mrb[1].mxu0 }
  0xe3   :  { %v256_v31 = vadd.f32 %v1232_v27, %v255_v30  ;;  %v972_v32 = vpop.f32.mrb[2].mxu0 }
  0xe4   :  { %v267_v33 = vadd.f32 %v972_v32, %v1232_v27  ;;  %v258_v34 = vpop.f32.mrb[3].mxu0  ;;  %v384_v36 = vmax.f32 %v264_v29, 0.0 }
  0xe5   :  { %v259_v35 = vadd.f32 %v1232_v27, %v258_v34  ;;  %v382_v38 = vmax.f32 %v256_v31, 0.0 }
  0xe6   :  { %v385_v37 = vmax.f32 %v267_v33, 0.0 }
  0xe7   :  { %v383_v39 = vmax.f32 %v259_v35, 0.0 }
  0xe8   :  { %v415_v40 = vpack.c.bf16 %v385_v37, %v384_v36 }
  0xe9   :  { %v414_v41 = vpack.c.bf16 %v383_v39, %v382_v38  ;;  %v975_v42 = vpop.f32.mrb[4].mxu0 }
  0xea   :  { %v280_v43 = vadd.f32 %v975_v42, %v1232_v27  ;;  %v271_v44 = vpop.f32.mrb[5].mxu0 }
  0xeb   :  { %v272_v45 = vadd.f32 %v1232_v27, %v271_v44  ;;  %v976_v46 = vpop.f32.mrb[6].mxu0  ;;  %1017 = vmatprep.mubr.bf16.mxu0 %v414_v41 }
  0xec   :  { %v283_v47 = vadd.f32 %v976_v46, %v1232_v27  ;;  %v274_v48 = vpop.f32.mrb[7].mxu0  ;;  %1018 = vmatmul.mubr.bf16.vlgmr.msra.gmra.mrb[32].mxu0 %v415_v40  ;;  %v388_v50 = vmax.f32 %v280_v43, 0.0 }
  0xed   :  { %v275_v49 = vadd.f32 %v1232_v27, %v274_v48  ;;  %v386_v52 = vmax.f32 %v272_v45, 0.0 }
  0xee   :  { %v389_v51 = vmax.f32 %v283_v47, 0.0 }
  0xef   :  { %v387_v53 = vmax.f32 %v275_v49, 0.0 }
  0xf0   :  { %v417_v54 = vpack.c.bf16 %v389_v51, %v388_v50 }
  0xf1   :  { %v979_v55 = vpop.f32.mrb[8].mxu0  ;;  %v416_v56 = vpack.c.bf16 %v387_v53, %v386_v52 }
  0xf2   :  { %v296_v57 = vadd.f32 %v979_v55, %v1232_v27  ;;  %v287_v58 = vpop.f32.mrb[9].mxu0 }
  0xf3   :  { %v288_v59 = vadd.f32 %v1232_v27, %v287_v58  ;;  %v980_v60 = vpop.f32.mrb[10].mxu0  ;;  %1021 = vmatprep.mubr.bf16.mxu1 %v416_v56 }
  0xf4   :  { %v299_v61 = vadd.f32 %v980_v60, %v1232_v27  ;;  %v290_v62 = vpop.f32.mrb[11].mxu0  ;;  %1022 = vmatmul.mubr.bf16.vlgmr.msra.gmra.mrb[0].mxu1 %v417_v54  ;;  %v392_v0 = vmax.f32 %v296_v57, 0.0 }
  0xf5   :  { %v291_v63 = vadd.f32 %v1232_v27, %v290_v62  ;;  %v390_v2 = vmax.f32 %v288_v59, 0.0 }
  0xf6   :  { %v393_v1 = vmax.f32 %v299_v61, 0.0 }
  0xf7   :  { %v391_v3 = vmax.f32 %v291_v63, 0.0 }
  0xf8   :  { %v419_v4 = vpack.c.bf16 %v393_v1, %v392_v0 }
  0xf9   :  { %v418_v5 = vpack.c.bf16 %v391_v3, %v390_v2  ;;  %v983_v6 = vpop.f32.mrb[12].mxu0 }
  0xfa   :  { %v312_v7 = vadd.f32 %v983_v6, %v1232_v27  ;;  %v303_v8 = vpop.f32.mrb[13].mxu0 }
  0xfb   :  { %v304_v9 = vadd.f32 %v1232_v27, %v303_v8  ;;  %v984_v10 = vpop.f32.mrb[14].mxu0  ;;  %1025 = vmatprep.mubr.bf16.mxu1 %v418_v5 }
  0xfc   :  { %v315_v11 = vadd.f32 %v984_v10, %v1232_v27  ;;  %v306_v12 = vpop.f32.mrb[15].mxu0  ;;  %1026 = vmatmul.mubr.bf16.gmra.mrb[4].mxu1 %v419_v4  ;;  %v396_v14 = vmax.f32 %v312_v7, 0.0 }
  0xfd   :  { %v307_v13 = vadd.f32 %v1232_v27, %v306_v12  ;;  %v394_v16 = vmax.f32 %v304_v9, 0.0 }
  0xfe   :  { %v397_v15 = vmax.f32 %v315_v11, 0.0 }
  0xff   :  { %v395_v17 = vmax.f32 %v307_v13, 0.0  ;;  %v12_v13 = vstv %s1509_s6 }
 0x100   :  { %v421_v18 = vpack.c.bf16 %v397_v15, %v396_v14  ;;  %13 = vst [vmem:[#allocation2] sm:$0x1] %v12_v13  ;;  %v1272_v14 = vld [vmem:[%s1510_s4] ss:$0 sm:$0xff] }
 0x101   :  { %v420_v19 = vpack.c.bf16 %v395_v17, %v394_v16  ;;  %v987_v20 = vpop.f32.mrb[16].mxu0 }
 0x102   :  { %v328_v21 = vadd.f32 %v987_v20, %v1232_v27  ;;  %v319_v22 = vpop.f32.mrb[17].mxu0 }
 0x103   :  { %v320_v23 = vadd.f32 %v1232_v27, %v319_v22  ;;  %v988_v24 = vpop.f32.mrb[18].mxu0  ;;  %1029 = vmatprep.mubr.bf16.mxu1 %v420_v19  ;;  %v1279_v19 = vld [vmem:[%s1511_s5] ss:$0 sm:$0xff] }
 0x104   :  { %v331_v25 = vadd.f32 %v988_v24, %v1232_v27  ;;  %v322_v26 = vpop.f32.mrb[19].mxu0  ;;  %1030 = vmatmul.mubr.bf16.gmra.mrb[8].mxu1 %v421_v18  ;;  %v400_v29 = vmax.f32 %v328_v21, 0.0 }
 0x105   :  { %v323_v28 = vadd.f32 %v1232_v27, %v322_v26  ;;  %v398_v31 = vmax.f32 %v320_v23, 0.0 }
 0x106   :  { %v401_v30 = vmax.f32 %v331_v25, 0.0 }
 0x107   :  { %v399_v32 = vmax.f32 %v323_v28, 0.0 }
 0x108   :  { %v423_v33 = vpack.c.bf16 %v401_v30, %v400_v29 }
 0x109   :  { %v422_v34 = vpack.c.bf16 %v399_v32, %v398_v31  ;;  %v991_v35 = vpop.f32.mrb[20].mxu0 }
 0x10a   :  { %v344_v36 = vadd.f32 %v991_v35, %v1232_v27  ;;  %v335_v37 = vpop.f32.mrb[21].mxu0 }
 0x10b   :  { %v336_v38 = vadd.f32 %v1232_v27, %v335_v37  ;;  %v992_v39 = vpop.f32.mrb[22].mxu0  ;;  %1033 = vmatprep.mubr.bf16.mxu1 %v422_v34 }
 0x10c   :  { %v347_v40 = vadd.f32 %v992_v39, %v1232_v27  ;;  %v338_v41 = vpop.f32.mrb[23].mxu0  ;;  %1034 = vmatmul.mubr.bf16.gmra.mrb[12].mxu1 %v423_v33  ;;  %v404_v43 = vmax.f32 %v344_v36, 0.0 }
 0x10d   :  { %v339_v42 = vadd.f32 %v1232_v27, %v338_v41  ;;  %v402_v45 = vmax.f32 %v336_v38, 0.0 }
 0x10e   :  { %v405_v44 = vmax.f32 %v347_v40, 0.0 }
 0x10f   :  { %v403_v46 = vmax.f32 %v339_v42, 0.0 }
 0x110   :  { %v425_v47 = vpack.c.bf16 %v405_v44, %v404_v43 }
 0x111   :  { %v424_v48 = vpack.c.bf16 %v403_v46, %v402_v45  ;;  %v995_v49 = vpop.f32.mrb[24].mxu0 }
 0x112   :  { %v360_v50 = vadd.f32 %v995_v49, %v1232_v27  ;;  %v351_v51 = vpop.f32.mrb[25].mxu0 }
 0x113   :  { %v352_v52 = vadd.f32 %v1232_v27, %v351_v51  ;;  %v996_v53 = vpop.f32.mrb[26].mxu0  ;;  %1037 = vmatprep.mubr.bf16.mxu1 %v424_v48 }
 0x114   :  { %v363_v54 = vadd.f32 %v996_v53, %v1232_v27  ;;  %v354_v55 = vpop.f32.mrb[27].mxu0  ;;  %1038 = vmatmul.mubr.bf16.gmra.mrb[16].mxu1 %v425_v47  ;;  %v408_v57 = vmax.f32 %v360_v50, 0.0 }
 0x115   :  { %v355_v56 = vadd.f32 %v1232_v27, %v354_v55  ;;  %v406_v59 = vmax.f32 %v352_v52, 0.0 }
 0x116   :  { %v409_v58 = vmax.f32 %v363_v54, 0.0 }
 0x117   :  { %v407_v60 = vmax.f32 %v355_v56, 0.0 }
 0x118   :  { %v427_v61 = vpack.c.bf16 %v409_v58, %v408_v57 }
 0x119   :  { %v426_v62 = vpack.c.bf16 %v407_v60, %v406_v59  ;;  %v999_v63 = vpop.f32.mrb[28].mxu0 }
 0x11a   :  { %v376_v0 = vadd.f32 %v999_v63, %v1232_v27  ;;  %v367_v1 = vpop.f32.mrb[29].mxu0 }
 0x11b   :  { %v368_v2 = vadd.f32 %v1232_v27, %v367_v1  ;;  %v1000_v3 = vpop.f32.mrb[30].mxu0  ;;  %1041 = vmatprep.mubr.bf16.mxu1 %v426_v62 }
 0x11c   :  { %v379_v4 = vadd.f32 %v1000_v3, %v1232_v27  ;;  %v370_v5 = vpop.f32.mrb[31].mxu0  ;;  %1042 = vmatmul.mubr.bf16.gmra.mrb[20].mxu1 %v427_v61  ;;  %v412_v7 = vmax.f32 %v376_v0, 0.0 }
 0x11d   :  { %v371_v6 = vadd.f32 %v1232_v27, %v370_v5  ;;  %v410_v9 = vmax.f32 %v368_v2, 0.0 }
 0x11e   :  { %v413_v8 = vmax.f32 %v379_v4, 0.0 }
 0x11f   :  { %v411_v10 = vmax.f32 %v371_v6, 0.0 }
 0x120   :  { %v429_v11 = vpack.c.bf16 %v413_v8, %v412_v7 }
 0x121   :  { %v428_v12 = vpack.c.bf16 %v411_v10, %v410_v9 }
 0x123   :  { %1045 = vmatprep.mubr.bf16.mxu1 %v428_v12 }
 0x124   :  { %1046 = vmatmul.mubr.bf16.gmra.mrb[24].mxu1 %v429_v11 }
 0x1bf   :  { %v1019_v15 = vpop.f32.mrb[32].mxu0 }
 0x1c0   :  { %v544_v27 = vadd.f32 %v1019_v15, %v1272_v14  ;;  %v535_v16 = vpop.f32.mrb[33].mxu0 }
 0x1c1   :  { %v536_v17 = vadd.f32 %v1272_v14, %v535_v16  ;;  %v1020_v18 = vpop.f32.mrb[34].mxu0 }
 0x1c2   :  { %v664_v20 = vmax.f32 %v544_v27, 0.0  ;;  %v547_v21 = vadd.f32 %v1020_v18, %v1272_v14  ;;  %v538_v22 = vpop.f32.mrb[35].mxu0 }
 0x1c3   :  { %v662_v23 = vmax.f32 %v536_v17, 0.0  ;;  %v539_v24 = vadd.f32 %v1272_v14, %v538_v22 }
 0x1c4   :  { %v665_v25 = vmax.f32 %v547_v21, 0.0  ;;  %v703_v26 = vmul.f32 %v1279_v19, %v664_v20 }
 0x1c5   :  { %v663_v28 = vmax.f32 %v539_v24, 0.0  ;;  %v701_v29 = vmul.f32 %v1279_v19, %v662_v23 }
 0x1c6   :  { %737 = vadd.xlane.f32.xlu1 %v703_v26  ;;  %v704_v33 = vmul.f32 %v1279_v19, %v665_v25 }
 0x1c7   :  { %v1023_v30 = vpop.f32.mrb[0].mxu1  ;;  %733 = vadd.xlane.f32.xlu0 %v701_v29  ;;  %v702_v36 = vmul.f32 %v1279_v19, %v663_v28 }
 0x1c8   :  { %v560_v31 = vadd.f32 %v1023_v30, %v1272_v14  ;;  %v551_v32 = vpop.f32.mrb[1].mxu1 }
 0x1c9   :  { %v552_v34 = vadd.f32 %v1272_v14, %v551_v32  ;;  %v1024_v35 = vpop.f32.mrb[2].mxu1 }
 0x1ca   :  { %v668_v37 = vmax.f32 %v560_v31, 0.0  ;;  %v563_v38 = vadd.f32 %v1024_v35, %v1272_v14  ;;  %v554_v39 = vpop.f32.mrb[3].mxu1  ;;  %739 = vadd.xlane.f32.xlu1 %v704_v33 }
 0x1cb   :  { %v555_v40 = vadd.f32 %v1272_v14, %v554_v39  ;;  %735 = vadd.xlane.f32.xlu0 %v702_v36  ;;  %v666_v43 = vmax.f32 %v552_v34, 0.0 }
 0x1cc   :  { %v669_v41 = vmax.f32 %v563_v38, 0.0  ;;  %v707_v42 = vmul.f32 %v1279_v19, %v668_v37 }
 0x1cd   :  { %v667_v44 = vmax.f32 %v555_v40, 0.0  ;;  %v705_v51 = vmul.f32 %v1279_v19, %v666_v43 }
 0x1ce   :  { %v708_v45 = vmul.f32 %v1279_v19, %v669_v41 }
 0x1cf   :  { %v1027_v46 = vpop.f32.mrb[4].mxu1  ;;  %745 = vadd.xlane.f32.xlu0 %v707_v42  ;;  %v706_v55 = vmul.f32 %v1279_v19, %v667_v44 }
 0x1d0   :  { %v576_v47 = vadd.f32 %v1027_v46, %v1272_v14  ;;  %v567_v48 = vpop.f32.mrb[5].mxu1  ;;  %747 = vadd.xlane.f32.xlu1 %v708_v45 }
 0x1d1   :  { %v568_v49 = vadd.f32 %v1272_v14, %v567_v48  ;;  %v1028_v50 = vpop.f32.mrb[6].mxu1 }
 0x1d2   :  { %v672_v52 = vmax.f32 %v576_v47, 0.0  ;;  %v579_v53 = vadd.f32 %v1028_v50, %v1272_v14  ;;  %v570_v54 = vpop.f32.mrb[7].mxu1 }
 0x1d3   :  { %v571_v56 = vadd.f32 %v1272_v14, %v570_v54  ;;  %741 = vadd.xlane.f32.xlu0 %v705_v51  ;;  %v670_v59 = vmax.f32 %v568_v49, 0.0 }
 0x1d4   :  { %v673_v57 = vmax.f32 %v579_v53, 0.0  ;;  %743 = vadd.xlane.f32.xlu1 %v706_v55  ;;  %v711_v58 = vmul.f32 %v1279_v19, %v672_v52 }
 0x1d5   :  { %v671_v60 = vmax.f32 %v571_v56, 0.0  ;;  %v709_v3 = vmul.f32 %v1279_v19, %v670_v59 }
 0x1d6   :  { %v712_v61 = vmul.f32 %v1279_v19, %v673_v57 }
 0x1d7   :  { %v1031_v62 = vpop.f32.mrb[8].mxu1  ;;  %753 = vadd.xlane.f32.xlu0 %v711_v58  ;;  %v710_v7 = vmul.f32 %v1279_v19, %v671_v60 }
 0x1d8   :  { %v592_v63 = vadd.f32 %v1031_v62, %v1272_v14  ;;  %v583_v0 = vpop.f32.mrb[9].mxu1  ;;  %755 = vadd.xlane.f32.xlu1 %v712_v61 }
 0x1d9   :  { %v584_v1 = vadd.f32 %v1272_v14, %v583_v0  ;;  %v1032_v2 = vpop.f32.mrb[10].mxu1 }
 0x1da   :  { %v676_v4 = vmax.f32 %v592_v63, 0.0  ;;  %v595_v5 = vadd.f32 %v1032_v2, %v1272_v14  ;;  %v586_v6 = vpop.f32.mrb[11].mxu1 }
 0x1db   :  { %v587_v8 = vadd.f32 %v1272_v14, %v586_v6  ;;  %749 = vadd.xlane.f32.xlu0 %v709_v3  ;;  %v674_v11 = vmax.f32 %v584_v1, 0.0 }
 0x1dc   :  { %v677_v9 = vmax.f32 %v595_v5, 0.0  ;;  %751 = vadd.xlane.f32.xlu1 %v710_v7  ;;  %v715_v10 = vmul.f32 %v1279_v19, %v676_v4 }
 0x1dd   :  { %v675_v12 = vmax.f32 %v587_v8, 0.0  ;;  %v713_v20 = vmul.f32 %v1279_v19, %v674_v11 }
 0x1de   :  { %v716_v13 = vmul.f32 %v1279_v19, %v677_v9 }
 0x1df   :  { %v1035_v15 = vpop.f32.mrb[12].mxu1  ;;  %761 = vadd.xlane.f32.xlu0 %v715_v10  ;;  %v714_v24 = vmul.f32 %v1279_v19, %v675_v12 }
 0x1e0   :  { %v608_v27 = vadd.f32 %v1035_v15, %v1272_v14  ;;  %v599_v16 = vpop.f32.mrb[13].mxu1  ;;  %763 = vadd.xlane.f32.xlu1 %v716_v13 }
 0x1e1   :  { %v600_v17 = vadd.f32 %v1272_v14, %v599_v16  ;;  %v1036_v18 = vpop.f32.mrb[14].mxu1 }
 0x1e2   :  { %v680_v21 = vmax.f32 %v608_v27, 0.0  ;;  %v611_v22 = vadd.f32 %v1036_v18, %v1272_v14  ;;  %v602_v23 = vpop.f32.mrb[15].mxu1  ;;  %v1343_v18 = vld [vmem:[#allocation2] ss:$0 sm:$0xff] }
 0x1e3   :  { %v603_v25 = vadd.f32 %v1272_v14, %v602_v23  ;;  %757 = vadd.xlane.f32.xlu0 %v713_v20  ;;  %v678_v29 = vmax.f32 %v600_v17, 0.0 }
 0x1e4   :  { %v681_v26 = vmax.f32 %v611_v22, 0.0  ;;  %759 = vadd.xlane.f32.xlu1 %v714_v24  ;;  %v719_v28 = vmul.f32 %v1279_v19, %v680_v21 }
 0x1e5   :  { %v679_v30 = vmax.f32 %v603_v25, 0.0  ;;  %v717_v37 = vmul.f32 %v1279_v19, %v678_v29 }
 0x1e6   :  { %v720_v31 = vmul.f32 %v1279_v19, %v681_v26 }
 0x1e7   :  { %v1039_v32 = vpop.f32.mrb[16].mxu1  ;;  %769 = vadd.xlane.f32.xlu0 %v719_v28  ;;  %v718_v41 = vmul.f32 %v1279_v19, %v679_v30 }
 0x1e8   :  { %v624_v33 = vadd.f32 %v1039_v32, %v1272_v14  ;;  %v615_v34 = vpop.f32.mrb[17].mxu1  ;;  %771 = vadd.xlane.f32.xlu1 %v720_v31 }
 0x1e9   :  { %v616_v35 = vadd.f32 %v1272_v14, %v615_v34  ;;  %v1040_v36 = vpop.f32.mrb[18].mxu1 }
 0x1ea   :  { %v684_v38 = vmax.f32 %v624_v33, 0.0  ;;  %v627_v39 = vadd.f32 %v1040_v36, %v1272_v14  ;;  %v618_v40 = vpop.f32.mrb[19].mxu1 }
 0x1eb   :  { %v619_v42 = vadd.f32 %v1272_v14, %v618_v40  ;;  %765 = vadd.xlane.f32.xlu0 %v717_v37  ;;  %v682_v45 = vmax.f32 %v616_v35, 0.0 }
 0x1ec   :  { %v685_v43 = vmax.f32 %v627_v39, 0.0  ;;  %767 = vadd.xlane.f32.xlu1 %v718_v41  ;;  %v723_v44 = vmul.f32 %v1279_v19, %v684_v38 }
 0x1ed   :  { %v683_v46 = vmax.f32 %v619_v42, 0.0  ;;  %v721_v53 = vmul.f32 %v1279_v19, %v682_v45 }
 0x1ee   :  { %v724_v47 = vmul.f32 %v1279_v19, %v685_v43 }
 0x1ef   :  { %v1043_v48 = vpop.f32.mrb[20].mxu1  ;;  %777 = vadd.xlane.f32.xlu0 %v723_v44  ;;  %v722_v57 = vmul.f32 %v1279_v19, %v683_v46 }
 0x1f0   :  { %v640_v49 = vadd.f32 %v1043_v48, %v1272_v14  ;;  %v631_v50 = vpop.f32.mrb[21].mxu1  ;;  %779 = vadd.xlane.f32.xlu1 %v724_v47 }
 0x1f1   :  { %v632_v51 = vadd.f32 %v1272_v14, %v631_v50  ;;  %v1044_v52 = vpop.f32.mrb[22].mxu1 }
 0x1f2   :  { %v688_v54 = vmax.f32 %v640_v49, 0.0  ;;  %v643_v55 = vadd.f32 %v1044_v52, %v1272_v14  ;;  %v634_v56 = vpop.f32.mrb[23].mxu1 }
 0x1f3   :  { %v635_v58 = vadd.f32 %v1272_v14, %v634_v56  ;;  %773 = vadd.xlane.f32.xlu0 %v721_v53  ;;  %v686_v61 = vmax.f32 %v632_v51, 0.0 }
 0x1f4   :  { %v689_v59 = vmax.f32 %v643_v55, 0.0  ;;  %775 = vadd.xlane.f32.xlu1 %v722_v57  ;;  %v727_v60 = vmul.f32 %v1279_v19, %v688_v54 }
 0x1f5   :  { %v687_v62 = vmax.f32 %v635_v58, 0.0  ;;  %v725_v5 = vmul.f32 %v1279_v19, %v686_v61 }
 0x1f6   :  { %v728_v63 = vmul.f32 %v1279_v19, %v689_v59 }
 0x1f7   :  { %v1047_v0 = vpop.f32.mrb[24].mxu1  ;;  %785 = vadd.xlane.f32.xlu0 %v727_v60  ;;  %v726_v7 = vmul.f32 %v1279_v19, %v687_v62 }
 0x1f8   :  { %v647_v1 = vpop.f32.mrb[25].mxu1  ;;  %787 = vadd.xlane.f32.xlu1 %v728_v63  ;;  %v656_v2 = vadd.f32 %v1047_v0, %v1272_v14 }
 0x1f9   :  { %v648_v3 = vadd.f32 %v1272_v14, %v647_v1  ;;  %v1048_v4 = vpop.f32.mrb[26].mxu1 }
 0x1fa   :  { %v650_v6 = vpop.f32.mrb[27].mxu1  ;;  %v659_v9 = vadd.f32 %v1048_v4, %v1272_v14  ;;  %v692_v11 = vmax.f32 %v656_v2, 0.0 }
 0x1fb   :  { %v690_v8 = vmax.f32 %v648_v3, 0.0  ;;  %v651_v10 = vadd.f32 %v1272_v14, %v650_v6  ;;  %781 = vadd.xlane.f32.xlu0 %v725_v5 }
 0x1fc   :  { %783 = vadd.xlane.f32.xlu1 %v726_v7  ;;  %v693_v15 = vmax.f32 %v659_v9, 0.0  ;;  %v731_v16 = vmul.f32 %v1279_v19, %v692_v11 }
 0x1fd   :  { %v691_v12 = vmax.f32 %v651_v10, 0.0  ;;  %v729_v13 = vmul.f32 %v1279_v19, %v690_v8 }
 0x1fe   :  { %v732_v17 = vmul.f32 %v1279_v19, %v693_v15 }
 0x1ff   :  { %789 = vadd.xlane.f32.xlu0 %v729_v13  ;;  %v730_v27 = vmul.f32 %v1279_v19, %v691_v12 }
 0x201   :  { %791 = vadd.xlane.f32.xlu1 %v730_v27 }
 0x203   :  { %793 = vadd.xlane.f32.xlu0 %v731_v16 }
 0x205   :  { %795 = vadd.xlane.f32.xlu1 %v732_v17 }
 0x253   :  { %v738_v14 = vpop.xlane.xlu1 %737 }
 0x254   :  { %v806_v20 = vadd.f32 %v1343_v18, %v738_v14  ;;  %v734_v21 = vpop.xlane.xlu0 %733 }
 0x255   :  { %v804_v22 = vadd.f32 %v1343_v18, %v734_v21 }
 0x256   :  { %839 = vst.msk [vmem:[%s1512_s7 + $0x10] sm:$0xff] %vm836_vm1, %v806_v20 }
 0x257   :  { %837 = vst.msk [vmem:[%s1512_s7] sm:$0xff] %vm836_vm1, %v804_v22  ;;  %v740_v19 = vpop.xlane.xlu1 %739 }
 0x258   :  { %v807_v23 = vadd.f32 %v1343_v18, %v740_v19  ;;  %v736_v24 = vpop.xlane.xlu0 %735 }
 0x259   :  { %v805_v25 = vadd.f32 %v1343_v18, %v736_v24 }
 0x25a   :  { %840 = vst.msk [vmem:[%s1512_s7 + $0x18] sm:$0xff] %vm836_vm1, %v807_v23 }
 0x25b   :  { %838 = vst.msk [vmem:[%s1512_s7 + $0x8] sm:$0xff] %vm836_vm1, %v805_v25 }
 0x25c   :  { %v746_v26 = vpop.xlane.xlu0 %745 }
 0x25d   :  { %v810_v28 = vadd.f32 %v1343_v18, %v746_v26  ;;  %v748_v29 = vpop.xlane.xlu1 %747 }
 0x25e   :  { %v811_v30 = vadd.f32 %v1343_v18, %v748_v29 }
 0x25f   :  { %843 = vst.msk [vmem:[%s1512_s7 + $0x30] sm:$0xff] %vm836_vm1, %v810_v28 }
 0x260   :  { %844 = vst.msk [vmem:[%s1512_s7 + $0x38] sm:$0xff] %vm836_vm1, %v811_v30  ;;  %v742_v31 = vpop.xlane.xlu0 %741 }
 0x261   :  { %v808_v32 = vadd.f32 %v1343_v18, %v742_v31  ;;  %v744_v33 = vpop.xlane.xlu1 %743 }
 0x262   :  { %v809_v34 = vadd.f32 %v1343_v18, %v744_v33 }
 0x263   :  { %841 = vst.msk [vmem:[%s1512_s7 + $0x20] sm:$0xff] %vm836_vm1, %v808_v32 }
 0x264   :  { %842 = vst.msk [vmem:[%s1512_s7 + $0x28] sm:$0xff] %vm836_vm1, %v809_v34  ;;  %v754_v35 = vpop.xlane.xlu0 %753 }
 0x265   :  { %v814_v36 = vadd.f32 %v1343_v18, %v754_v35  ;;  %v756_v37 = vpop.xlane.xlu1 %755 }
 0x266   :  { %v815_v38 = vadd.f32 %v1343_v18, %v756_v37 }
 0x267   :  { %847 = vst.msk [vmem:[%s1512_s7 + $0x50] sm:$0xff] %vm836_vm1, %v814_v36 }
 0x268   :  { %848 = vst.msk [vmem:[%s1512_s7 + $0x58] sm:$0xff] %vm836_vm1, %v815_v38  ;;  %v750_v39 = vpop.xlane.xlu0 %749 }
 0x269   :  { %v812_v40 = vadd.f32 %v1343_v18, %v750_v39  ;;  %v752_v41 = vpop.xlane.xlu1 %751 }
 0x26a   :  { %v813_v42 = vadd.f32 %v1343_v18, %v752_v41 }
 0x26b   :  { %845 = vst.msk [vmem:[%s1512_s7 + $0x40] sm:$0xff] %vm836_vm1, %v812_v40 }
 0x26c   :  { %846 = vst.msk [vmem:[%s1512_s7 + $0x48] sm:$0xff] %vm836_vm1, %v813_v42  ;;  %v762_v43 = vpop.xlane.xlu0 %761 }
 0x26d   :  { %v818_v44 = vadd.f32 %v1343_v18, %v762_v43  ;;  %v764_v45 = vpop.xlane.xlu1 %763 }
 0x26e   :  { %v819_v46 = vadd.f32 %v1343_v18, %v764_v45 }
 0x26f   :  { %851 = vst.msk [vmem:[%s1512_s7 + $0x70] sm:$0xff] %vm836_vm1, %v818_v44 }
 0x270   :  { %852 = vst.msk [vmem:[%s1512_s7 + $0x78] sm:$0xff] %vm836_vm1, %v819_v46  ;;  %v758_v47 = vpop.xlane.xlu0 %757 }
 0x271   :  { %v816_v48 = vadd.f32 %v1343_v18, %v758_v47  ;;  %v760_v49 = vpop.xlane.xlu1 %759 }
 0x272   :  { %v817_v50 = vadd.f32 %v1343_v18, %v760_v49 }
 0x273   :  { %849 = vst.msk [vmem:[%s1512_s7 + $0x60] sm:$0xff] %vm836_vm1, %v816_v48 }
 0x274   :  { %850 = vst.msk [vmem:[%s1512_s7 + $0x68] sm:$0xff] %vm836_vm1, %v817_v50  ;;  %v770_v51 = vpop.xlane.xlu0 %769 }
 0x275   :  { %v822_v52 = vadd.f32 %v1343_v18, %v770_v51  ;;  %v772_v53 = vpop.xlane.xlu1 %771 }
 0x276   :  { %v823_v54 = vadd.f32 %v1343_v18, %v772_v53 }
 0x277   :  { %855 = vst.msk [vmem:[%s1512_s7 + $0x90] sm:$0xff] %vm836_vm1, %v822_v52 }
 0x278   :  { %856 = vst.msk [vmem:[%s1512_s7 + $0x98] sm:$0xff] %vm836_vm1, %v823_v54  ;;  %v766_v55 = vpop.xlane.xlu0 %765 }
 0x279   :  { %v820_v56 = vadd.f32 %v1343_v18, %v766_v55  ;;  %v768_v57 = vpop.xlane.xlu1 %767 }
 0x27a   :  { %v821_v58 = vadd.f32 %v1343_v18, %v768_v57 }
 0x27b   :  { %853 = vst.msk [vmem:[%s1512_s7 + $0x80] sm:$0xff] %vm836_vm1, %v820_v56 }
 0x27c   :  { %854 = vst.msk [vmem:[%s1512_s7 + $0x88] sm:$0xff] %vm836_vm1, %v821_v58  ;;  %v778_v59 = vpop.xlane.xlu0 %777 }
 0x27d   :  { %v826_v60 = vadd.f32 %v1343_v18, %v778_v59  ;;  %v780_v61 = vpop.xlane.xlu1 %779 }
 0x27e   :  { %v827_v62 = vadd.f32 %v1343_v18, %v780_v61 }
 0x27f   :  { %859 = vst.msk [vmem:[%s1512_s7 + $0xb0] sm:$0xff] %vm836_vm1, %v826_v60 }
 0x280   :  { %860 = vst.msk [vmem:[%s1512_s7 + $0xb8] sm:$0xff] %vm836_vm1, %v827_v62  ;;  %v774_v63 = vpop.xlane.xlu0 %773 }
 0x281   :  { %v824_v0 = vadd.f32 %v1343_v18, %v774_v63  ;;  %v776_v1 = vpop.xlane.xlu1 %775 }
 0x282   :  { %v825_v2 = vadd.f32 %v1343_v18, %v776_v1 }
 0x283   :  { %857 = vst.msk [vmem:[%s1512_s7 + $0xa0] sm:$0xff] %vm836_vm1, %v824_v0 }
 0x284   :  { %858 = vst.msk [vmem:[%s1512_s7 + $0xa8] sm:$0xff] %vm836_vm1, %v825_v2  ;;  %v786_v3 = vpop.xlane.xlu0 %785 }
 0x285   :  { %v830_v4 = vadd.f32 %v1343_v18, %v786_v3  ;;  %v788_v5 = vpop.xlane.xlu1 %787 }
 0x286   :  { %v831_v6 = vadd.f32 %v1343_v18, %v788_v5 }
 0x287   :  { %863 = vst.msk [vmem:[%s1512_s7 + $0xd0] sm:$0xff] %vm836_vm1, %v830_v4 }
 0x288   :  { %864 = vst.msk [vmem:[%s1512_s7 + $0xd8] sm:$0xff] %vm836_vm1, %v831_v6  ;;  %v782_v7 = vpop.xlane.xlu0 %781 }
 0x289   :  { %v828_v8 = vadd.f32 %v1343_v18, %v782_v7  ;;  %v784_v9 = vpop.xlane.xlu1 %783 }
 0x28a   :  { %v829_v10 = vadd.f32 %v1343_v18, %v784_v9 }
 0x28b   :  { %861 = vst.msk [vmem:[%s1512_s7 + $0xc0] sm:$0xff] %vm836_vm1, %v828_v8 }
 0x28c   :  { %862 = vst.msk [vmem:[%s1512_s7 + $0xc8] sm:$0xff] %vm836_vm1, %v829_v10  ;;  %v790_v11 = vpop.xlane.xlu0 %789 }
 0x28d   :  { %v832_v12 = vadd.f32 %v1343_v18, %v790_v11 }
 0x28e   :  { %v792_v13 = vpop.xlane.xlu1 %791 }
 0x28f   :  { %865 = vst.msk [vmem:[%s1512_s7 + $0xe0] sm:$0xff] %vm836_vm1, %v832_v12  ;;  %v833_v15 = vadd.f32 %v1343_v18, %v792_v13 }
 0x290   :  { %v794_v27 = vpop.xlane.xlu0 %793 }
 0x291   :  { %866 = vst.msk [vmem:[%s1512_s7 + $0xe8] sm:$0xff] %vm836_vm1, %v833_v15  ;;  %v834_v16 = vadd.f32 %v1343_v18, %v794_v27 }
 0x292   :  { %v796_v17 = vpop.xlane.xlu1 %795 }
 0x293   :  { %867 = vst.msk [vmem:[%s1512_s7 + $0xf0] sm:$0xff] %vm836_vm1, %v834_v16  ;;  %v835_v14 = vadd.f32 %v1343_v18, %v796_v17 }
 0x295   :  { %868 = vst.msk [vmem:[%s1512_s7 + $0xf8] sm:$0xff] %vm836_vm1, %v835_v14 }

</bundles_post_ra>
